<compile_context>
chip_gen: v6e
topology: v6e:2x2x1
jax: 0.10.0
libtpu: 0.0.40
codegen_flags: <defaults>
</compile_context>

<pallas_src>
import functools

import jax
import jax.numpy as jnp
from jax.experimental import pallas as pl
from jax.experimental.pallas import tpu as pltpu


def _vse_kernel(x_ref, w_ref, b_ref, out_ref, *, inv_n, no_imgnorm):
    # x_ref: (Bt, N, Cp) native dtype | w_ref: (Cp, Lp) f32 | b_ref: (1, Lp) f32
    # out_ref: (Bt, Lp) f32
    x = x_ref[...].astype(jnp.float32)                          # upcast after HBM read

    # AdaptiveAvgPool1d(1) over the region axis N (static 1/N multiply, no divide).
    pooled = jnp.sum(x, axis=1) * inv_n                         # (Bt, Cp) f32

    # Linear(img_dim, latent): host-pre-transposed weight -> pure MXU matmul,
    # f32 operands + f32 accumulation (FLOPs are negligible; keeps accuracy tight).
    feats = jnp.dot(pooled, w_ref[...], preferred_element_type=jnp.float32)
    feats = feats + b_ref[...]                                  # (Bt, Lp) f32

    if not no_imgnorm:
        # l2norm: x / (sqrt(sum x^2) + 1e-8); padded columns are exactly 0 so the
        # padded Lp does not change the norm.  Reciprocal goes to the EUP slot.
        norm = jnp.sqrt(jnp.sum(feats * feats, axis=-1, keepdims=True)) + 1e-8
        feats = feats * pl.reciprocal(norm, approx=True)

    out_ref[...] = feats                                        # dense (Bt, Lp) store


def _round_up(x, m):
    return ((x + m - 1) // m) * m


def _vmem_capacity_bytes():
    try:
        return int(pltpu.get_tpu_info().vmem_capacity_bytes)
    except Exception:
        return 64 << 20          # v7x-sized conservative fallback


def _pick_block_b(batch, per_bt_bytes, fixed_bytes, vmem_budget):
    """Largest VMEM-fitting batch tile (multiple of 8, <=256); keep >=2 grid steps
    for large batches so the batch axis can split across v7x's two TensorCores."""
    avail = max(vmem_budget - fixed_bytes, 8 * per_bt_bytes)
    bt = int(avail // per_bt_bytes)
    bt = max(8, (min(bt, 256) // 8) * 8)
    if batch > 8:
        half = -(-batch // 2)                  # cdiv(batch, 2)
        bt = min(bt, _round_up(half, 8))
    else:
        bt = 8
    return bt


def vse_image_encoder(images, fc_weight, fc_bias, *, no_imgnorm=False, block_b=None):
    """images: (B, N, img_dim) any float dtype (bf16 halves HBM traffic);
    fc_weight: (latent, img_dim) [nn.Linear layout]; fc_bias: (latent,).

    Returns (B, 1, latent) f32, matching VSEImageEncoder.forward.
    """
    B, N, C = images.shape
    L = fc_weight.shape[0]
    Lp = _round_up(L, 128)                     # lane-dense output width
    Cp = _round_up(C, 128)                     # lane-dense image feature width

    # Host-side layout plumbing: transpose weight to (C, L), zero-pad both the
    # input (C->Cp) and output (L->Lp) dims; zero rows/cols do not change results.
    w_p = jnp.pad(jnp.transpose(fc_weight).astype(jnp.float32),
                  ((0, Cp - C), (0, Lp - L)))
    b_p = jnp.pad(fc_bias.astype(jnp.float32).reshape(1, L), ((0, 0), (0, Lp - L)))

    # Keep images in their NATIVE dtype (no f32 upcast at the call site).
    x = images if C == Cp else jnp.pad(images, ((0, 0), (0, 0), (0, Cp - C)))

    itemsize = jnp.dtype(x.dtype).itemsize
    per_bt = 2 * N * Cp * itemsize + 2 * Lp * 4          # double-buffered in/out tiles
    fixed = 2 * (w_p.size * 4 + b_p.size * 4) + (4 << 20)  # 2x weight: safe for fallback
    vmem_budget = (3 * _vmem_capacity_bytes()) // 4       # ~48 MiB on v7x, ~96 on v5e/v6e

    Bt = _pick_block_b(B, per_bt, fixed, vmem_budget) if block_b is None else int(block_b)
    Bp = _round_up(B, Bt)
    if Bp != B:
        x = jnp.pad(x, ((0, Bp - B), (0, 0), (0, 0)))     # pad batch instead of Bt=1

    vmem_limit = int(fixed + Bt * per_bt)
    kernel = functools.partial(_vse_kernel, inv_n=1.0 / N, no_imgnorm=no_imgnorm)

    def build(single_buffer_params):
        # Constant-index weight/bias only need one VMEM buffer (pipeline_mode);
        # fall back to default double-buffering if pipeline_mode is unsupported.
        extra = {"pipeline_mode": pl.Buffered(1)} if single_buffer_params else {}
        return pl.pallas_call(
            kernel,
            out_shape=jax.ShapeDtypeStruct((Bp, Lp), jnp.float32),
            grid_spec=pltpu.PrefetchScalarGridSpec(
                num_scalar_prefetch=0,
                grid=(Bp // Bt,),
                in_specs=[
                    pl.BlockSpec((Bt, N, Cp), lambda i: (i, 0, 0)),       # images tile
                    pl.BlockSpec((Cp, Lp), lambda i: (0, 0), **extra),    # fc weight (resident)
                    pl.BlockSpec((1, Lp), lambda i: (0, 0), **extra),     # fc bias   (resident)
                ],
                out_specs=pl.BlockSpec((Bt, Lp), lambda i: (i, 0)),       # dense 2-D output
            ),
            compiler_params=pltpu.CompilerParams(
                dimension_semantics=("parallel",),
                vmem_limit_bytes=vmem_limit),
        )

    try:
        out = jax.block_until_ready(build(True)(x, w_p, b_p))
    except Exception:
        out = jax.block_until_ready(build(False)(x, w_p, b_p))

    return out[:B, :L].reshape(B, 1, L)


def _reference(images_f32, fc_weight, fc_bias, no_imgnorm=False):
    """Pure-JAX (f32) replica of the PyTorch forward, for correctness check."""
    pooled = jnp.mean(images_f32, axis=1, keepdims=True)                 # (B, 1, C)
    feats = jnp.einsum("bnc,lc->bnl", pooled, fc_weight) + fc_bias       # (B, 1, L)
    if not no_imgnorm:
        norm = jnp.sqrt(jnp.sum(feats * feats, axis=-1, keepdims=True)) + 1e-8
        feats = feats / norm
    return feats


if __name__ == "__main__":
    # Small, module-consistent shapes; B/C/L deliberately not tile-aligned to
    # exercise the batch / img_dim / latent padding paths.  Images are bf16 to
    # exercise the native-dtype (halved HBM DMA) path.
    B, N, IMG_DIM, LATENT = 6, 12, 40, 48
    key = jax.random.PRNGKey(0)
    k_img, k_w, k_b = jax.random.split(key, 3)
    images = jax.random.normal(k_img, (B, N, IMG_DIM), jnp.float32).astype(jnp.bfloat16)
    fc_w = 0.1 * jax.random.normal(k_w, (LATENT, IMG_DIM), jnp.float32)  # nn.Linear.weight layout
    fc_b = 0.1 * jax.random.normal(k_b, (LATENT,), jnp.float32)          # nn.Linear.bias

    out = vse_image_encoder(images, fc_w, fc_b)
    out = jax.block_until_ready(out)

    ref = _reference(images.astype(jnp.float32), fc_w, fc_b)
    assert out.shape == (B, 1, LATENT), out.shape
    max_err = float(jnp.max(jnp.abs(out - ref)))
    # f32 matmul; remaining error sources are pooling order + EUP approx reciprocal.
    assert jnp.allclose(out, ref, atol=1e-2, rtol=1e-2), \
        f"mismatch vs reference (max abs err {max_err})"
    print("KERNEL_OK")
</pallas_src>

<mosaic_0001>
module attributes {stable_mosaic.version = 11 : i64} {
  func.func @_vse_kernel(%arg0: i32, %arg1: memref<8x12x128xbf16, #tpu.memory_space<vmem>>, %arg2: memref<128x128xf32, #tpu.memory_space<vmem>>, %arg3: memref<1x128xf32, #tpu.memory_space<vmem>>, %arg4: memref<8x128xf32, #tpu.memory_space<vmem>>) attributes {dimension_semantics = [#tpu.dimension_semantics<parallel>], iteration_bounds = array<i64: 1>, scalar_prefetch = 0 : i64, scratch_operands = 0 : i64, tpu.core_type = #tpu.core_type<tc>, window_params = [{transform_indices = @transform_0, window_bounds = array<i64: 8, 12, 128>}, {pipeline_mode = #tpu.pipeline_mode<synchronous>, transform_indices = @transform_1, window_bounds = array<i64: 128, 128>}, {pipeline_mode = #tpu.pipeline_mode<synchronous>, transform_indices = @transform_2, window_bounds = array<i64: 1, 128>}, {transform_indices = @transform_3, window_bounds = array<i64: 8, 128>}]} {
    %c0 = arith.constant 0 : index
    %c0_0 = arith.constant 0 : index
    %c0_1 = arith.constant 0 : index
    %0 = vector.load %arg1[%c0, %c0_0, %c0_1] : memref<8x12x128xbf16, #tpu.memory_space<vmem>>, vector<8x12x128xbf16>
    %1 = arith.extf %0 : vector<8x12x128xbf16> to vector<8x12x128xf32>
    %cst = arith.constant dense<0.000000e+00> : vector<8x128xf32>
    %2 = vector.multi_reduction <add>, %1, %cst [1] : vector<8x12x128xf32> to vector<8x128xf32>
    %cst_2 = arith.constant 0.0833333358 : f32
    %3 = vector.broadcast %cst_2 : f32 to vector<8x128xf32>
    %4 = arith.mulf %2, %3 : vector<8x128xf32>
    %c0_3 = arith.constant 0 : index
    %c0_4 = arith.constant 0 : index
    %5 = vector.load %arg2[%c0_3, %c0_4] : memref<128x128xf32, #tpu.memory_space<vmem>>, vector<128x128xf32>
    %cst_5 = arith.constant dense<0.000000e+00> : vector<8x128xf32>
    %6 = tpu.matmul %4, %5, %cst_5 {dimension_numbers = #tpu.dot_dimension_numbers<[1], [0], [0], [1], [0, 0, 1, 1], [], []>} : vector<8x128xf32>, vector<128x128xf32>, vector<8x128xf32> -> vector<8x128xf32>
    %c0_6 = arith.constant 0 : index
    %c0_7 = arith.constant 0 : index
    %7 = vector.load %arg3[%c0_6, %c0_7] : memref<1x128xf32, #tpu.memory_space<vmem>>, vector<1x128xf32>
    %8 = vector.broadcast %7 : vector<1x128xf32> to vector<8x128xf32>
    %9 = arith.addf %6, %8 : vector<8x128xf32>
    %10 = arith.mulf %9, %9 : vector<8x128xf32>
    %cst_8 = arith.constant dense<0.000000e+00> : vector<8xf32>
    %11 = vector.multi_reduction <add>, %10, %cst_8 [1] : vector<8x128xf32> to vector<8xf32>
    %12 = vector.shape_cast %11 : vector<8xf32> to vector<8x1xf32>
    %13 = math.sqrt %12 : vector<8x1xf32>
    %cst_9 = arith.constant 9.99999993E-9 : f32
    %14 = vector.broadcast %cst_9 : f32 to vector<8x1xf32>
    %15 = arith.addf %13, %14 : vector<8x1xf32>
    %16 = tpu.reciprocal %15 {approx = true} : vector<8x1xf32> -> vector<8x1xf32>
    %17 = vector.broadcast %16 : vector<8x1xf32> to vector<8x128xf32>
    %18 = arith.mulf %9, %17 : vector<8x128xf32>
    %c0_10 = arith.constant 0 : index
    %c0_11 = arith.constant 0 : index
    %19 = vector.load %arg4[%c0_10, %c0_11] : memref<8x128xf32, #tpu.memory_space<vmem>>, vector<8x128xf32>
    tpu.vector_store %arg4[%c0_10, %c0_11], %18 {strides = array<i32>} : memref<8x128xf32, #tpu.memory_space<vmem>>, vector<8x128xf32>,
    return
  }
  func.func @transform_0(%arg0: i32) -> (i32, i32, i32) {
    %c0_i32 = arith.constant 0 : i32
    %c0_i32_0 = arith.constant 0 : i32
    %c0_i32_1 = arith.constant 0 : i32
    return %arg0, %c0_i32, %c0_i32_0 : i32, i32, i32
  }
  func.func @transform_1(%arg0: i32) -> (i32, i32) {
    %c0_i32 = arith.constant 0 : i32
    %c0_i32_0 = arith.constant 0 : i32
    %c0_i32_1 = arith.constant 0 : i32
    return %c0_i32, %c0_i32_0 : i32, i32
  }
  func.func @transform_2(%arg0: i32) -> (i32, i32) {
    %c0_i32 = arith.constant 0 : i32
    %c0_i32_0 = arith.constant 0 : i32
    %c0_i32_1 = arith.constant 0 : i32
    return %c0_i32, %c0_i32_0 : i32, i32
  }
  func.func @transform_3(%arg0: i32) -> (i32, i32) {
    %c0_i32 = arith.constant 0 : i32
    %c0_i32_0 = arith.constant 0 : i32
    return %arg0, %c0_i32 : i32, i32
  }
}

module attributes {stable_mosaic.version = 11 : i64} {
  func.func @_vse_kernel(%arg0: i32, %arg1: memref<8x12x128xbf16, #tpu.memory_space<vmem>>, %arg2: memref<128x128xf32, #tpu.memory_space<vmem>>, %arg3: memref<1x128xf32, #tpu.memory_space<vmem>>, %arg4: memref<8x128xf32, #tpu.memory_space<vmem>>) attributes {dimension_semantics = [#tpu.dimension_semantics<parallel>], iteration_bounds = array<i64: 1>, scalar_prefetch = 0 : i64, scratch_operands = 0 : i64, tpu.core_type = #tpu.core_type<tc>, window_params = [{transform_indices = @transform_0, window_bounds = array<i64: 8, 12, 128>}, {pipeline_mode = #tpu.pipeline_mode<synchronous>, transform_indices = @transform_1, window_bounds = array<i64: 128, 128>}, {pipeline_mode = #tpu.pipeline_mode<synchronous>, transform_indices = @transform_2, window_bounds = array<i64: 1, 128>}, {transform_indices = @transform_3, window_bounds = array<i64: 8, 128>}]} {
    %c0 = arith.constant 0 : index
    %c0_0 = arith.constant 0 : index
    %c0_1 = arith.constant 0 : index
    %0 = vector.load %arg1[%c0, %c0_0, %c0_1] : memref<8x12x128xbf16, #tpu.memory_space<vmem>>, vector<8x12x128xbf16>
    %1 = arith.extf %0 : vector<8x12x128xbf16> to vector<8x12x128xf32>
    %cst = arith.constant dense<0.000000e+00> : vector<8x128xf32>
    %2 = vector.multi_reduction <add>, %1, %cst [1] : vector<8x12x128xf32> to vector<8x128xf32>
    %cst_2 = arith.constant 0.0833333358 : f32
    %3 = vector.broadcast %cst_2 : f32 to vector<8x128xf32>
    %4 = arith.mulf %2, %3 : vector<8x128xf32>
    %c0_3 = arith.constant 0 : index
    %c0_4 = arith.constant 0 : index
    %5 = vector.load %arg2[%c0_3, %c0_4] : memref<128x128xf32, #tpu.memory_space<vmem>>, vector<128x128xf32>
    %cst_5 = arith.constant dense<0.000000e+00> : vector<8x128xf32>
    %6 = tpu.matmul %4, %5, %cst_5 {dimension_numbers = #tpu.dot_dimension_numbers<[1], [0], [0], [1], [0, 0, 1, 1], [], []>} : vector<8x128xf32>, vector<128x128xf32>, vector<8x128xf32> -> vector<8x128xf32>
    %c0_6 = arith.constant 0 : index
    %c0_7 = arith.constant 0 : index
    %7 = vector.load %arg3[%c0_6, %c0_7] : memref<1x128xf32, #tpu.memory_space<vmem>>, vector<1x128xf32>
    %8 = vector.broadcast %7 : vector<1x128xf32> to vector<8x128xf32>
    %9 = arith.addf %6, %8 : vector<8x128xf32>
    %10 = arith.mulf %9, %9 : vector<8x128xf32>
    %cst_8 = arith.constant dense<0.000000e+00> : vector<8xf32>
    %11 = vector.multi_reduction <add>, %10, %cst_8 [1] : vector<8x128xf32> to vector<8xf32>
    %12 = vector.shape_cast %11 : vector<8xf32> to vector<8x1xf32>
    %13 = math.sqrt %12 : vector<8x1xf32>
    %cst_9 = arith.constant 9.99999993E-9 : f32
    %14 = vector.broadcast %cst_9 : f32 to vector<8x1xf32>
    %15 = arith.addf %13, %14 : vector<8x1xf32>
    %16 = tpu.reciprocal %15 {approx = true} : vector<8x1xf32> -> vector<8x1xf32>
    %17 = vector.broadcast %16 : vector<8x1xf32> to vector<8x128xf32>
    %18 = arith.mulf %9, %17 : vector<8x128xf32>
    %c0_10 = arith.constant 0 : index
    %c0_11 = arith.constant 0 : index
    %19 = vector.load %arg4[%c0_10, %c0_11] : memref<8x128xf32, #tpu.memory_space<vmem>>, vector<8x128xf32>
    tpu.vector_store %arg4[%c0_10, %c0_11], %18 {strides = array<i32>} : memref<8x128xf32, #tpu.memory_space<vmem>>, vector<8x128xf32>,
    return
  }
  func.func @transform_0(%arg0: i32) -> (i32, i32, i32) {
    %c0_i32 = arith.constant 0 : i32
    %c0_i32_0 = arith.constant 0 : i32
    %c0_i32_1 = arith.constant 0 : i32
    return %arg0, %c0_i32, %c0_i32_0 : i32, i32, i32
  }
  func.func @transform_1(%arg0: i32) -> (i32, i32) {
    %c0_i32 = arith.constant 0 : i32
    %c0_i32_0 = arith.constant 0 : i32
    %c0_i32_1 = arith.constant 0 : i32
    return %c0_i32, %c0_i32_0 : i32, i32
  }
  func.func @transform_2(%arg0: i32) -> (i32, i32) {
    %c0_i32 = arith.constant 0 : i32
    %c0_i32_0 = arith.constant 0 : i32
    %c0_i32_1 = arith.constant 0 : i32
    return %c0_i32, %c0_i32_0 : i32, i32
  }
  func.func @transform_3(%arg0: i32) -> (i32, i32) {
    %c0_i32 = arith.constant 0 : i32
    %c0_i32_0 = arith.constant 0 : i32
    return %arg0, %c0_i32 : i32, i32
  }
}

</mosaic_0001>

<bundles_post_ra>
// kernel: tpu_custom_call.1
= control target key start
LH: loop header
LB: loop body
LE: loop exit
PB: predicated region body
PF: predicated region fallthrough
CT: control target
= control target key end

     0   :  { %8 = vsyncpa [#allocation3], 0  ;;  %s485_s0 = inlined_call_operand.vmem [shape: bf16[8,12,128], index: 0, kind: input, shape index: {}]   ;;  %s486_s1 = inlined_call_operand.hbm [shape: f32[128,128], index: 1, kind: input, shape index: {}]   ;;  %s487_s2 = inlined_call_operand.vmem [shape: f32[1,128], index: 2, kind: input, shape index: {}]   ;;  %s488_s3 = inlined_call_operand.hbm [shape: f32[8,128], index: 3, kind: output, shape index: {}]  }
   0x1   :  { %9 = vsyncpa [#allocation4], 0  ;;  %s386_s12 = smov [#allocation2]  }
   0x2   :  { %s17_s13 = sshll.u32 %s386_s12, 4  ;;  %s18_s13 = int_to_ptr.vmem [resolvable:$true] %s17_s13 }
   0x3   :  { %s350_s14 = scalar_lea.vmem %s18_s13, 2048  ;;  %p355_p1 = scmp.lt.s32.totalorder %s18_s13, %s18_s13 }
   0x4   :  { %p351_p0 = scmp.ne.s32.totalorder %s18_s13, %s350_s14  ;;  %p356_p2 = scmp.lt.s32.totalorder %s350_s14, %s350_s14 }
   0x6   :  { %p357_p3 = por %p356_p2, %p355_p1 }
   0x8   :  { %p358_p4 = pnand %p357_p3, %p351_p0 }
   0xa   :  { %361 = shalt.err (!%p358_p4)
}
   0xb   :  { %s387_s15 = smov 128   ;;  %s388_s16 = smov 8  }
   0xc   :  { %23 = dma.hbm_to_vmem [thread:$0]  %s486_s1, 2048, %s18_s13, [#allocation3], %s387_s15, %s387_s15, %s388_s16  }
   0xd   :  { %382 = dma.done.wait [#allocation3], 2048  }
   0xe   :  { %383 = vsyncadd [#allocation3], 4294965248  ;;  %v389_v0 = vmov 0.0   ;;  %vm390_vm0 = vmmov 0   ;;  %v149_v1 = vld [vmem:[#allocation2 + $0x78] sm:$0xff]  ;;  %v148_v2 = vld [vmem:[#allocation2 + $0x70] sm:$0xff] }
   0xf   :  { %297 = vmatprep.subr.mxu0 %v389_v0  ;;  %329 = vmatprep.mubr.msk.f32.mxu0 %vm390_vm0, %v389_v0  ;;  %v147_v3 = vld [vmem:[#allocation2 + $0x68] sm:$0xff]  ;;  %v146_v4 = vld [vmem:[#allocation2 + $0x60] sm:$0xff]  ;;  %v145_v5 = vld [vmem:[#allocation2 + $0x58] sm:$0xff]  ;;  %vm61_vm1 = vcmask 1043456   ;;  %vm165_vm2 = vcmask 1041409   ;;  %vm167_vm3 = vcmask 1042434  }
  0x10   :  { %298 = vmatpush3.msra.mxu0 %v149_v1  ;;  %v29_v6 = vld [vmem:[%s485_s0] ss:$8 sps:$4 sm:$0xff]   ;;  %v30_v7 = vld [vmem:[%s485_s0 + $0x4] sm:$0x3]  ;;  %v144_v8 = vld [vmem:[#allocation2 + $0x50] sm:$0xff]  ;;  %vm169_vm4 = vcmask 1043459  }
  0x11   :  { %299 = vmatprep.subr.mxu0 %v389_v0  ;;  %v32_v9 = vld [vmem:[%s485_s0 + $0xc] sm:$0x3]  ;;  %v33_v10 = vld [vmem:[%s485_s0 + $0x10] ss:$8 sps:$4 sm:$0xff]   ;;  %v34_v11 = vld [vmem:[%s485_s0 + $0x14] sm:$0x3]  ;;  %v45_v12 = vunpack.c.l.bf16 %v29_v6  ;;  %v46_v13 = vunpack.c.l.bf16 %v30_v7  ;;  %v47_v14 = vunpack.c.h.bf16 %v29_v6 }
  0x12   :  { %300 = vmatpush3.msra.mxu0 %v148_v2  ;;  %v36_v15 = vld [vmem:[%s485_s0 + $0x1c] sm:$0x3]  ;;  %v37_v16 = vld [vmem:[%s485_s0 + $0x20] ss:$8 sps:$4 sm:$0xff]   ;;  %v38_v17 = vld [vmem:[%s485_s0 + $0x24] sm:$0x3]  ;;  %v48_v18 = vunpack.c.l.bf16 %v32_v9  ;;  %v49_v19 = vunpack.c.l.bf16 %v33_v10  ;;  %v50_v20 = vunpack.c.l.bf16 %v34_v11  ;;  %v51_v21 = vunpack.c.h.bf16 %v33_v10 }
  0x13   :  { %301 = vmatprep.subr.mxu0 %v389_v0  ;;  %v40_v22 = vld [vmem:[%s485_s0 + $0x2c] sm:$0x3]  ;;  %v41_v23 = vld [vmem:[%s485_s0 + $0x30] ss:$8 sps:$4 sm:$0xff]   ;;  %v42_v24 = vld [vmem:[%s485_s0 + $0x34] sm:$0x3]  ;;  %v52_v25 = vunpack.c.l.bf16 %v36_v15  ;;  %v53_v26 = vunpack.c.l.bf16 %v37_v16  ;;  %v54_v27 = vunpack.c.l.bf16 %v38_v17  ;;  %v55_v28 = vunpack.c.h.bf16 %v37_v16 }
  0x14   :  { %302 = vmatpush3.msra.mxu0 %v147_v3  ;;  %v44_v29 = vld [vmem:[%s485_s0 + $0x3c] sm:$0x3]  ;;  %v56_v30 = vunpack.c.l.bf16 %v40_v22  ;;  %v57_v31 = vunpack.c.l.bf16 %v41_v23  ;;  %v58_v32 = vunpack.c.l.bf16 %v42_v24  ;;  %v59_v33 = vunpack.c.h.bf16 %v41_v23  ;;  %v143_v34 = vld [vmem:[#allocation2 + $0x48] sm:$0xff]  ;;  %v142_v43 = vld [vmem:[#allocation2 + $0x40] sm:$0xff]  ;;  %s391_s16 = smov [#allocation5]  }
  0x15   :  { %303 = vmatprep.subr.mxu0 %v389_v0  ;;  %v60_v35 = vunpack.c.l.bf16 %v44_v29  ;;  %v62_v36 = vsel %vm61_vm1, %v46_v13, 0.0  ;;  %v70_v37 = vsel %vm61_vm1, %v48_v18, 0.0  ;;  %v78_v38 = vsel %vm61_vm1, %v50_v20, 0.0  ;;  %v141_v52 = vld [vmem:[#allocation2 + $0x38] sm:$0xff]  ;;  %v140_v61 = vld [vmem:[#allocation2 + $0x30] sm:$0xff]  ;;  %v139_v7 = vld [vmem:[#allocation2 + $0x28] sm:$0xff] }
  0x16   :  { %304 = vmatpush3.msra.mxu0 %v146_v4  ;;  %v63_v39 = vadd.f32 %v62_v36, %v45_v12  ;;  %v71_v40 = vadd.f32 %v70_v37, %v47_v14  ;;  %v79_v41 = vadd.f32 %v78_v38, %v49_v19  ;;  %v86_v42 = vsel %vm61_vm1, %v52_v25, 0.0  ;;  %v138_v16 = vld [vmem:[#allocation2 + $0x20] sm:$0xff]  ;;  %v137_v25 = vld [vmem:[#allocation2 + $0x18] sm:$0xff]  ;;  %s270_s17 = sshll.u32 %s391_s16, 4  ;;  %s271_s17 = int_to_ptr.vmem [resolvable:$true] %s270_s17 }
  0x17   :  { %305 = vmatprep.subr.mxu0 %v389_v0  ;;  %v87_v44 = vadd.f32 %v86_v42, %v51_v21  ;;  %v94_v45 = vsel %vm61_vm1, %v54_v27, 0.0  ;;  %v102_v46 = vsel %vm61_vm1, %v56_v30, 0.0  ;;  %v110_v47 = vsel %vm61_vm1, %v58_v32, 0.0  ;;  %p367_p6 = scmp.lt.s32.totalorder %s271_s17, %s271_s17 }
  0x18   :  { %306 = vmatpush3.msra.mxu0 %v145_v5  ;;  %v64_v48 = vrot.slane %v63_v39, 4  ;;  %v72_v49 = vrot.slane %v71_v40, 4  ;;  %v80_v50 = vrot.slane %v79_v41, 4  ;;  %v95_v51 = vadd.f32 %v94_v45, %v53_v26 }
  0x19   :  { %307 = vmatprep.subr.mxu0 %v389_v0  ;;  %v88_v53 = vrot.slane %v87_v44, 4  ;;  %v103_v54 = vadd.f32 %v102_v46, %v55_v28  ;;  %v111_v55 = vadd.f32 %v110_v47, %v57_v31  ;;  %v118_v56 = vsel %vm61_vm1, %v60_v35, 0.0 }
  0x1a   :  { %308 = vmatpush3.msra.mxu0 %v144_v8  ;;  %v65_v57 = vadd.f32 %v64_v48, %v63_v39  ;;  %v73_v58 = vadd.f32 %v72_v49, %v71_v40  ;;  %v81_v59 = vadd.f32 %v80_v50, %v79_v41  ;;  %v96_v60 = vrot.slane %v95_v51, 4  ;;  %v134_v50 = vld [vmem:[#allocation2] sm:$0xff] }
  0x1b   :  { %309 = vmatprep.subr.mxu0 %v389_v0  ;;  %v89_v62 = vadd.f32 %v88_v53, %v87_v44  ;;  %v104_v63 = vrot.slane %v103_v54, 4  ;;  %v112_v1 = vrot.slane %v111_v55, 4  ;;  %v119_v2 = vadd.f32 %v118_v56, %v59_v33 }
  0x1c   :  { %310 = vmatpush3.msra.mxu0 %v143_v34  ;;  %v66_v3 = vrot.slane %v65_v57, 2  ;;  %v74_v4 = vrot.slane %v73_v58, 2  ;;  %v82_v5 = vrot.slane %v81_v59, 2  ;;  %v97_v6 = vadd.f32 %v96_v60, %v95_v51  ;;  %v136_v34 = vld [vmem:[#allocation2 + $0x10] sm:$0xff] }
  0x1d   :  { %311 = vmatprep.subr.mxu0 %v389_v0  ;;  %v90_v8 = vrot.slane %v89_v62, 2  ;;  %v105_v9 = vadd.f32 %v104_v63, %v103_v54  ;;  %v113_v10 = vadd.f32 %v112_v1, %v111_v55  ;;  %v120_v11 = vrot.slane %v119_v2, 4 }
  0x1e   :  { %312 = vmatpush3.msra.mxu0 %v142_v43  ;;  %v67_v12 = vadd.f32 %v66_v3, %v65_v57  ;;  %v75_v13 = vadd.f32 %v74_v4, %v73_v58  ;;  %v83_v14 = vadd.f32 %v82_v5, %v81_v59  ;;  %v98_v15 = vrot.slane %v97_v6, 2  ;;  %v135_v43 = vld [vmem:[#allocation2 + $0x8] sm:$0xff] }
  0x1f   :  { %313 = vmatprep.subr.mxu0 %v389_v0  ;;  %v91_v17 = vadd.f32 %v90_v8, %v89_v62  ;;  %v106_v18 = vrot.slane %v105_v9, 2  ;;  %v114_v19 = vrot.slane %v113_v10, 2  ;;  %v121_v20 = vadd.f32 %v120_v11, %v119_v2 }
  0x20   :  { %314 = vmatpush3.msra.mxu0 %v141_v52  ;;  %v68_v21 = vrot.slane %v67_v12, 1  ;;  %v76_v22 = vrot.slane %v75_v13, 1  ;;  %v84_v23 = vrot.slane %v83_v14, 1  ;;  %v99_v24 = vadd.f32 %v98_v15, %v97_v6 }
  0x21   :  { %315 = vmatprep.subr.mxu0 %v389_v0  ;;  %v92_v26 = vrot.slane %v91_v17, 1  ;;  %v107_v27 = vadd.f32 %v106_v18, %v105_v9  ;;  %v115_v28 = vadd.f32 %v114_v19, %v113_v10  ;;  %v122_v29 = vrot.slane %v121_v20, 2 }
  0x22   :  { %316 = vmatpush3.msra.mxu0 %v140_v61  ;;  %v69_v30 = vadd.f32 %v68_v21, %v67_v12  ;;  %v77_v31 = vadd.f32 %v76_v22, %v75_v13  ;;  %v85_v32 = vadd.f32 %v84_v23, %v83_v14  ;;  %v100_v33 = vrot.slane %v99_v24, 1  ;;  %v279_v61 = vld [vmem:[%s487_s2] ss:$0 sm:$0xff]  ;;  %s362_s2 = scalar_lea.vmem %s271_s17, 128 }
  0x23   :  { %317 = vmatprep.subr.mxu0 %v389_v0  ;;  %v93_v35 = vadd.f32 %v92_v26, %v91_v17  ;;  %v108_v36 = vrot.slane %v107_v27, 1  ;;  %v116_v37 = vrot.slane %v115_v28, 1  ;;  %v123_v38 = vadd.f32 %v122_v29, %v121_v20  ;;  %p363_p5 = scmp.ne.s32.totalorder %s271_s17, %s362_s2  ;;  %p368_p7 = scmp.lt.s32.totalorder %s362_s2, %s362_s2 }
  0x24   :  { %318 = vmatpush3.msra.mxu0 %v139_v7  ;;  %v101_v39 = vadd.f32 %v100_v33, %v99_v24  ;;  %v126_v40 = vmul.f32 0.083333336, %v69_v30  ;;  %v127_v41 = vmul.f32 0.083333336, %v77_v31  ;;  %v128_v42 = vmul.f32 0.083333336, %v85_v32 }
  0x25   :  { %319 = vmatprep.subr.mxu0 %v389_v0  ;;  %v109_v44 = vadd.f32 %v108_v36, %v107_v27  ;;  %v117_v45 = vadd.f32 %v116_v37, %v115_v28  ;;  %v124_v46 = vrot.slane %v123_v38, 1  ;;  %v129_v47 = vmul.f32 0.083333336, %v93_v35  ;;  %p369_p8 = por %p368_p7, %p367_p6 }
  0x26   :  { %320 = vmatpush3.msra.mxu0 %v138_v16  ;;  %v130_v48 = vmul.f32 0.083333336, %v101_v39  ;;  %v166_v49 = vsel %vm165_vm2, %v127_v41, %v126_v40  ;;  %vm171_vm5 = vcmask 1044484   ;;  %vm173_vm6 = vcmask 1045509  }
  0x27   :  { %321 = vmatprep.subr.mxu0 %v389_v0  ;;  %v125_v51 = vadd.f32 %v124_v46, %v123_v38  ;;  %v131_v52 = vmul.f32 0.083333336, %v109_v44  ;;  %v132_v53 = vmul.f32 0.083333336, %v117_v45  ;;  %v168_v54 = vsel %vm167_vm3, %v128_v42, %v166_v49  ;;  %p370_p9 = pnand %p369_p8, %p363_p5 }
  0x28   :  { %322 = vmatpush3.msra.mxu0 %v137_v25  ;;  %v170_v55 = vsel %vm169_vm4, %v129_v47, %v168_v54  ;;  %vm175_vm7 = vcmask 1046534   ;;  %vm177_vm8 = vcmask 1047559  }
  0x29   :  { %323 = vmatprep.subr.mxu0 %v389_v0  ;;  %v133_v56 = vmul.f32 0.083333336, %v125_v51  ;;  %v172_v57 = vsel %vm171_vm5, %v130_v48, %v170_v55 }
  0x2a   :  { %324 = vmatpush3.msra.mxu0 %v136_v34  ;;  %v174_v58 = vsel %vm173_vm6, %v131_v52, %v172_v57 }
  0x2b   :  { %325 = vmatprep.subr.mxu0 %v389_v0  ;;  %v176_v59 = vsel %vm175_vm7, %v132_v53, %v174_v58 }
  0x2c   :  { %326 = vmatpush3.msra.mxu0 %v135_v43  ;;  %v178_v60 = vsel %vm177_vm8, %v133_v56, %v176_v59 }
  0x2d   :  { %327 = vmatprep.subr.mxu0 %v389_v0 }
  0x2e   :  { %328 = vmatpush3.msra.mxu0 %v134_v50 }
  0x2f   :  { %330 = vmatmul.mubr.f32.vlgmr.msra.gmra.mxu0 %v178_v60 }
  0xef   :  { %v246_v62 = vpop.f32.mrf.mxu0 }
  0xf0   :  { %v247_v63 = vadd.f32 %v279_v61, %v246_v62 }
  0xf1   :  { %v331_v1 = vpop.f32.mrf.mxu0 }
  0xf2   :  { %v250_v2 = vmul.f32 %v247_v63, %v247_v63 }
  0xf4   :  { %251 = vadd.xlane.f32.xlu0 %v250_v2 }
 0x17d   :  { %v252_v3 = vpop.xlane.xlu0 %251 }
 0x17e   :  { %338 = vrsqrt.f32 %v252_v3  ;;  %vm255_vm9 = vcmp.eq.f32.partialorder %v252_v3, inf  ;;  %v258_v5 = vand.u32 2147483648, %v252_v3  ;;  %vm257_vm10 = vcmp.eq.f32.partialorder %v252_v3, 0.0 }
 0x18b   :  { %v339_v0 = vpop.eup %338 }
 0x18c   :  { %v254_v4 = vmul.f32 %v339_v0, %v252_v3 }
 0x18e   :  { %v256_v6 = vsel %vm255_vm9, %v252_v3, %v254_v4 }
 0x18f   :  { %v259_v7 = vsel %vm257_vm10, %v258_v5, %v256_v6 }
 0x190   :  { %v260_v8 = vadd.f32 1e-08, %v259_v7 }
 0x192   :  { %340 = vrcp.f32 %v260_v8 }
 0x19f   :  { %v341_v9 = vpop.eup %340 }
 0x1a0   :  { %v262_v10 = vmul.f32 %v341_v9, %v247_v63 }
 0x1a2   :  { %263 = vst [vmem:[#allocation5] sm:$0xff] %v262_v10 }
 0x1a3   :  { %373 = shalt.err (!%p370_p9)
}
 0x1a4   :  { %273 = dma.vmem_to_hbm [thread:$0]  %s271_s17, 128, %s488_s3, [#allocation4]  }
 0x1a5   :  { %384 = dma.done.wait [#allocation4], 128  }
 0x1a6   :  { %385 = vsyncadd [#allocation4], 4294967168 }
 0x1a7   :  { %277 = vsyncpa [#allocation3], 1 }
 0x1a8   :  { %278 = vsyncpa [#allocation4], 1 }

// kernel: tpu_custom_call.1
= control target key start
LH: loop header
LB: loop body
LE: loop exit
PB: predicated region body
PF: predicated region fallthrough
CT: control target
= control target key end

     0   :  { %8 = vsyncpa [#allocation3], 0  ;;  %s485_s0 = inlined_call_operand.vmem [shape: bf16[8,12,128], index: 0, kind: input, shape index: {}]   ;;  %s486_s1 = inlined_call_operand.hbm [shape: f32[128,128], index: 1, kind: input, shape index: {}]   ;;  %s487_s2 = inlined_call_operand.vmem [shape: f32[1,128], index: 2, kind: input, shape index: {}]   ;;  %s488_s3 = inlined_call_operand.hbm [shape: f32[8,128], index: 3, kind: output, shape index: {}]  }
   0x1   :  { %9 = vsyncpa [#allocation4], 0  ;;  %s386_s12 = smov [#allocation2]  }
   0x2   :  { %s17_s13 = sshll.u32 %s386_s12, 4  ;;  %s18_s13 = int_to_ptr.vmem [resolvable:$true] %s17_s13 }
   0x3   :  { %s350_s14 = scalar_lea.vmem %s18_s13, 2048  ;;  %p355_p1 = scmp.lt.s32.totalorder %s18_s13, %s18_s13 }
   0x4   :  { %p351_p0 = scmp.ne.s32.totalorder %s18_s13, %s350_s14  ;;  %p356_p2 = scmp.lt.s32.totalorder %s350_s14, %s350_s14 }
   0x6   :  { %p357_p3 = por %p356_p2, %p355_p1 }
   0x8   :  { %p358_p4 = pnand %p357_p3, %p351_p0 }
   0xa   :  { %361 = shalt.err (!%p358_p4)
}
   0xb   :  { %s387_s15 = smov 128   ;;  %s388_s16 = smov 8  }
   0xc   :  { %23 = dma.hbm_to_vmem [thread:$0]  %s486_s1, 2048, %s18_s13, [#allocation3], %s387_s15, %s387_s15, %s388_s16  }
   0xd   :  { %382 = dma.done.wait [#allocation3], 2048  }
   0xe   :  { %383 = vsyncadd [#allocation3], 4294965248  ;;  %v389_v0 = vmov 0.0   ;;  %vm390_vm0 = vmmov 0   ;;  %v149_v1 = vld [vmem:[#allocation2 + $0x78] sm:$0xff]  ;;  %v148_v2 = vld [vmem:[#allocation2 + $0x70] sm:$0xff] }
   0xf   :  { %297 = vmatprep.subr.mxu0 %v389_v0  ;;  %329 = vmatprep.mubr.msk.f32.mxu0 %vm390_vm0, %v389_v0  ;;  %v147_v3 = vld [vmem:[#allocation2 + $0x68] sm:$0xff]  ;;  %v146_v4 = vld [vmem:[#allocation2 + $0x60] sm:$0xff]  ;;  %v145_v5 = vld [vmem:[#allocation2 + $0x58] sm:$0xff]  ;;  %vm61_vm1 = vcmask 1043456   ;;  %vm165_vm2 = vcmask 1041409   ;;  %vm167_vm3 = vcmask 1042434  }
  0x10   :  { %298 = vmatpush3.msra.mxu0 %v149_v1  ;;  %v29_v6 = vld [vmem:[%s485_s0] ss:$8 sps:$4 sm:$0xff]   ;;  %v30_v7 = vld [vmem:[%s485_s0 + $0x4] sm:$0x3]  ;;  %v144_v8 = vld [vmem:[#allocation2 + $0x50] sm:$0xff]  ;;  %vm169_vm4 = vcmask 1043459  }
  0x11   :  { %299 = vmatprep.subr.mxu0 %v389_v0  ;;  %v32_v9 = vld [vmem:[%s485_s0 + $0xc] sm:$0x3]  ;;  %v33_v10 = vld [vmem:[%s485_s0 + $0x10] ss:$8 sps:$4 sm:$0xff]   ;;  %v34_v11 = vld [vmem:[%s485_s0 + $0x14] sm:$0x3]  ;;  %v45_v12 = vunpack.c.l.bf16 %v29_v6  ;;  %v46_v13 = vunpack.c.l.bf16 %v30_v7  ;;  %v47_v14 = vunpack.c.h.bf16 %v29_v6 }
  0x12   :  { %300 = vmatpush3.msra.mxu0 %v148_v2  ;;  %v36_v15 = vld [vmem:[%s485_s0 + $0x1c] sm:$0x3]  ;;  %v37_v16 = vld [vmem:[%s485_s0 + $0x20] ss:$8 sps:$4 sm:$0xff]   ;;  %v38_v17 = vld [vmem:[%s485_s0 + $0x24] sm:$0x3]  ;;  %v48_v18 = vunpack.c.l.bf16 %v32_v9  ;;  %v49_v19 = vunpack.c.l.bf16 %v33_v10  ;;  %v50_v20 = vunpack.c.l.bf16 %v34_v11  ;;  %v51_v21 = vunpack.c.h.bf16 %v33_v10 }
  0x13   :  { %301 = vmatprep.subr.mxu0 %v389_v0  ;;  %v40_v22 = vld [vmem:[%s485_s0 + $0x2c] sm:$0x3]  ;;  %v41_v23 = vld [vmem:[%s485_s0 + $0x30] ss:$8 sps:$4 sm:$0xff]   ;;  %v42_v24 = vld [vmem:[%s485_s0 + $0x34] sm:$0x3]  ;;  %v52_v25 = vunpack.c.l.bf16 %v36_v15  ;;  %v53_v26 = vunpack.c.l.bf16 %v37_v16  ;;  %v54_v27 = vunpack.c.l.bf16 %v38_v17  ;;  %v55_v28 = vunpack.c.h.bf16 %v37_v16 }
  0x14   :  { %302 = vmatpush3.msra.mxu0 %v147_v3  ;;  %v44_v29 = vld [vmem:[%s485_s0 + $0x3c] sm:$0x3]  ;;  %v56_v30 = vunpack.c.l.bf16 %v40_v22  ;;  %v57_v31 = vunpack.c.l.bf16 %v41_v23  ;;  %v58_v32 = vunpack.c.l.bf16 %v42_v24  ;;  %v59_v33 = vunpack.c.h.bf16 %v41_v23  ;;  %v143_v34 = vld [vmem:[#allocation2 + $0x48] sm:$0xff]  ;;  %v142_v43 = vld [vmem:[#allocation2 + $0x40] sm:$0xff]  ;;  %s391_s16 = smov [#allocation5]  }
  0x15   :  { %303 = vmatprep.subr.mxu0 %v389_v0  ;;  %v60_v35 = vunpack.c.l.bf16 %v44_v29  ;;  %v62_v36 = vsel %vm61_vm1, %v46_v13, 0.0  ;;  %v70_v37 = vsel %vm61_vm1, %v48_v18, 0.0  ;;  %v78_v38 = vsel %vm61_vm1, %v50_v20, 0.0  ;;  %v141_v52 = vld [vmem:[#allocation2 + $0x38] sm:$0xff]  ;;  %v140_v61 = vld [vmem:[#allocation2 + $0x30] sm:$0xff]  ;;  %v139_v7 = vld [vmem:[#allocation2 + $0x28] sm:$0xff] }
  0x16   :  { %304 = vmatpush3.msra.mxu0 %v146_v4  ;;  %v63_v39 = vadd.f32 %v62_v36, %v45_v12  ;;  %v71_v40 = vadd.f32 %v70_v37, %v47_v14  ;;  %v79_v41 = vadd.f32 %v78_v38, %v49_v19  ;;  %v86_v42 = vsel %vm61_vm1, %v52_v25, 0.0  ;;  %v138_v16 = vld [vmem:[#allocation2 + $0x20] sm:$0xff]  ;;  %v137_v25 = vld [vmem:[#allocation2 + $0x18] sm:$0xff]  ;;  %s270_s17 = sshll.u32 %s391_s16, 4  ;;  %s271_s17 = int_to_ptr.vmem [resolvable:$true] %s270_s17 }
  0x17   :  { %305 = vmatprep.subr.mxu0 %v389_v0  ;;  %v87_v44 = vadd.f32 %v86_v42, %v51_v21  ;;  %v94_v45 = vsel %vm61_vm1, %v54_v27, 0.0  ;;  %v102_v46 = vsel %vm61_vm1, %v56_v30, 0.0  ;;  %v110_v47 = vsel %vm61_vm1, %v58_v32, 0.0  ;;  %p367_p6 = scmp.lt.s32.totalorder %s271_s17, %s271_s17 }
  0x18   :  { %306 = vmatpush3.msra.mxu0 %v145_v5  ;;  %v64_v48 = vrot.slane %v63_v39, 4  ;;  %v72_v49 = vrot.slane %v71_v40, 4  ;;  %v80_v50 = vrot.slane %v79_v41, 4  ;;  %v95_v51 = vadd.f32 %v94_v45, %v53_v26 }
  0x19   :  { %307 = vmatprep.subr.mxu0 %v389_v0  ;;  %v88_v53 = vrot.slane %v87_v44, 4  ;;  %v103_v54 = vadd.f32 %v102_v46, %v55_v28  ;;  %v111_v55 = vadd.f32 %v110_v47, %v57_v31  ;;  %v118_v56 = vsel %vm61_vm1, %v60_v35, 0.0 }
  0x1a   :  { %308 = vmatpush3.msra.mxu0 %v144_v8  ;;  %v65_v57 = vadd.f32 %v64_v48, %v63_v39  ;;  %v73_v58 = vadd.f32 %v72_v49, %v71_v40  ;;  %v81_v59 = vadd.f32 %v80_v50, %v79_v41  ;;  %v96_v60 = vrot.slane %v95_v51, 4  ;;  %v134_v50 = vld [vmem:[#allocation2] sm:$0xff] }
  0x1b   :  { %309 = vmatprep.subr.mxu0 %v389_v0  ;;  %v89_v62 = vadd.f32 %v88_v53, %v87_v44  ;;  %v104_v63 = vrot.slane %v103_v54, 4  ;;  %v112_v1 = vrot.slane %v111_v55, 4  ;;  %v119_v2 = vadd.f32 %v118_v56, %v59_v33 }
  0x1c   :  { %310 = vmatpush3.msra.mxu0 %v143_v34  ;;  %v66_v3 = vrot.slane %v65_v57, 2  ;;  %v74_v4 = vrot.slane %v73_v58, 2  ;;  %v82_v5 = vrot.slane %v81_v59, 2  ;;  %v97_v6 = vadd.f32 %v96_v60, %v95_v51  ;;  %v136_v34 = vld [vmem:[#allocation2 + $0x10] sm:$0xff] }
  0x1d   :  { %311 = vmatprep.subr.mxu0 %v389_v0  ;;  %v90_v8 = vrot.slane %v89_v62, 2  ;;  %v105_v9 = vadd.f32 %v104_v63, %v103_v54  ;;  %v113_v10 = vadd.f32 %v112_v1, %v111_v55  ;;  %v120_v11 = vrot.slane %v119_v2, 4 }
  0x1e   :  { %312 = vmatpush3.msra.mxu0 %v142_v43  ;;  %v67_v12 = vadd.f32 %v66_v3, %v65_v57  ;;  %v75_v13 = vadd.f32 %v74_v4, %v73_v58  ;;  %v83_v14 = vadd.f32 %v82_v5, %v81_v59  ;;  %v98_v15 = vrot.slane %v97_v6, 2  ;;  %v135_v43 = vld [vmem:[#allocation2 + $0x8] sm:$0xff] }
  0x1f   :  { %313 = vmatprep.subr.mxu0 %v389_v0  ;;  %v91_v17 = vadd.f32 %v90_v8, %v89_v62  ;;  %v106_v18 = vrot.slane %v105_v9, 2  ;;  %v114_v19 = vrot.slane %v113_v10, 2  ;;  %v121_v20 = vadd.f32 %v120_v11, %v119_v2 }
  0x20   :  { %314 = vmatpush3.msra.mxu0 %v141_v52  ;;  %v68_v21 = vrot.slane %v67_v12, 1  ;;  %v76_v22 = vrot.slane %v75_v13, 1  ;;  %v84_v23 = vrot.slane %v83_v14, 1  ;;  %v99_v24 = vadd.f32 %v98_v15, %v97_v6 }
  0x21   :  { %315 = vmatprep.subr.mxu0 %v389_v0  ;;  %v92_v26 = vrot.slane %v91_v17, 1  ;;  %v107_v27 = vadd.f32 %v106_v18, %v105_v9  ;;  %v115_v28 = vadd.f32 %v114_v19, %v113_v10  ;;  %v122_v29 = vrot.slane %v121_v20, 2 }
  0x22   :  { %316 = vmatpush3.msra.mxu0 %v140_v61  ;;  %v69_v30 = vadd.f32 %v68_v21, %v67_v12  ;;  %v77_v31 = vadd.f32 %v76_v22, %v75_v13  ;;  %v85_v32 = vadd.f32 %v84_v23, %v83_v14  ;;  %v100_v33 = vrot.slane %v99_v24, 1  ;;  %v279_v61 = vld [vmem:[%s487_s2] ss:$0 sm:$0xff]  ;;  %s362_s2 = scalar_lea.vmem %s271_s17, 128 }
  0x23   :  { %317 = vmatprep.subr.mxu0 %v389_v0  ;;  %v93_v35 = vadd.f32 %v92_v26, %v91_v17  ;;  %v108_v36 = vrot.slane %v107_v27, 1  ;;  %v116_v37 = vrot.slane %v115_v28, 1  ;;  %v123_v38 = vadd.f32 %v122_v29, %v121_v20  ;;  %p363_p5 = scmp.ne.s32.totalorder %s271_s17, %s362_s2  ;;  %p368_p7 = scmp.lt.s32.totalorder %s362_s2, %s362_s2 }
  0x24   :  { %318 = vmatpush3.msra.mxu0 %v139_v7  ;;  %v101_v39 = vadd.f32 %v100_v33, %v99_v24  ;;  %v126_v40 = vmul.f32 0.083333336, %v69_v30  ;;  %v127_v41 = vmul.f32 0.083333336, %v77_v31  ;;  %v128_v42 = vmul.f32 0.083333336, %v85_v32 }
  0x25   :  { %319 = vmatprep.subr.mxu0 %v389_v0  ;;  %v109_v44 = vadd.f32 %v108_v36, %v107_v27  ;;  %v117_v45 = vadd.f32 %v116_v37, %v115_v28  ;;  %v124_v46 = vrot.slane %v123_v38, 1  ;;  %v129_v47 = vmul.f32 0.083333336, %v93_v35  ;;  %p369_p8 = por %p368_p7, %p367_p6 }
  0x26   :  { %320 = vmatpush3.msra.mxu0 %v138_v16  ;;  %v130_v48 = vmul.f32 0.083333336, %v101_v39  ;;  %v166_v49 = vsel %vm165_vm2, %v127_v41, %v126_v40  ;;  %vm171_vm5 = vcmask 1044484   ;;  %vm173_vm6 = vcmask 1045509  }
  0x27   :  { %321 = vmatprep.subr.mxu0 %v389_v0  ;;  %v125_v51 = vadd.f32 %v124_v46, %v123_v38  ;;  %v131_v52 = vmul.f32 0.083333336, %v109_v44  ;;  %v132_v53 = vmul.f32 0.083333336, %v117_v45  ;;  %v168_v54 = vsel %vm167_vm3, %v128_v42, %v166_v49  ;;  %p370_p9 = pnand %p369_p8, %p363_p5 }
  0x28   :  { %322 = vmatpush3.msra.mxu0 %v137_v25  ;;  %v170_v55 = vsel %vm169_vm4, %v129_v47, %v168_v54  ;;  %vm175_vm7 = vcmask 1046534   ;;  %vm177_vm8 = vcmask 1047559  }
  0x29   :  { %323 = vmatprep.subr.mxu0 %v389_v0  ;;  %v133_v56 = vmul.f32 0.083333336, %v125_v51  ;;  %v172_v57 = vsel %vm171_vm5, %v130_v48, %v170_v55 }
  0x2a   :  { %324 = vmatpush3.msra.mxu0 %v136_v34  ;;  %v174_v58 = vsel %vm173_vm6, %v131_v52, %v172_v57 }
  0x2b   :  { %325 = vmatprep.subr.mxu0 %v389_v0  ;;  %v176_v59 = vsel %vm175_vm7, %v132_v53, %v174_v58 }
  0x2c   :  { %326 = vmatpush3.msra.mxu0 %v135_v43  ;;  %v178_v60 = vsel %vm177_vm8, %v133_v56, %v176_v59 }
  0x2d   :  { %327 = vmatprep.subr.mxu0 %v389_v0 }
  0x2e   :  { %328 = vmatpush3.msra.mxu0 %v134_v50 }
  0x2f   :  { %330 = vmatmul.mubr.f32.vlgmr.msra.gmra.mxu0 %v178_v60 }
  0xef   :  { %v246_v62 = vpop.f32.mrf.mxu0 }
  0xf0   :  { %v247_v63 = vadd.f32 %v279_v61, %v246_v62 }
  0xf1   :  { %v331_v1 = vpop.f32.mrf.mxu0 }
  0xf2   :  { %v250_v2 = vmul.f32 %v247_v63, %v247_v63 }
  0xf4   :  { %251 = vadd.xlane.f32.xlu0 %v250_v2 }
 0x17d   :  { %v252_v3 = vpop.xlane.xlu0 %251 }
 0x17e   :  { %338 = vrsqrt.f32 %v252_v3  ;;  %vm255_vm9 = vcmp.eq.f32.partialorder %v252_v3, inf  ;;  %v258_v5 = vand.u32 2147483648, %v252_v3  ;;  %vm257_vm10 = vcmp.eq.f32.partialorder %v252_v3, 0.0 }
 0x18b   :  { %v339_v0 = vpop.eup %338 }
 0x18c   :  { %v254_v4 = vmul.f32 %v339_v0, %v252_v3 }
 0x18e   :  { %v256_v6 = vsel %vm255_vm9, %v252_v3, %v254_v4 }
 0x18f   :  { %v259_v7 = vsel %vm257_vm10, %v258_v5, %v256_v6 }
 0x190   :  { %v260_v8 = vadd.f32 1e-08, %v259_v7 }
 0x192   :  { %340 = vrcp.f32 %v260_v8 }
 0x19f   :  { %v341_v9 = vpop.eup %340 }
 0x1a0   :  { %v262_v10 = vmul.f32 %v341_v9, %v247_v63 }
 0x1a2   :  { %263 = vst [vmem:[#allocation5] sm:$0xff] %v262_v10 }
 0x1a3   :  { %373 = shalt.err (!%p370_p9)
}
 0x1a4   :  { %273 = dma.vmem_to_hbm [thread:$0]  %s271_s17, 128, %s488_s3, [#allocation4]  }
 0x1a5   :  { %384 = dma.done.wait [#allocation4], 128  }
 0x1a6   :  { %385 = vsyncadd [#allocation4], 4294967168 }
 0x1a7   :  { %277 = vsyncpa [#allocation3], 1 }
 0x1a8   :  { %278 = vsyncpa [#allocation4], 1 }

</bundles_post_ra>
